<compile_context>
chip_gen: v6e
topology: v6e:2x2x1
jax: 0.10.0
libtpu: 0.0.40
codegen_flags: <defaults>
</compile_context>

<pallas_src>
import jax
import jax.numpy as jnp
from jax.experimental import pallas as pl
from jax.experimental.pallas import tpu as pltpu

# Quantization parameters (fixed by the PyTorch module).
IN_SCALE = 0.5
IN_ZP = 128        # handled by centering the quantized input to int8 (q - 128)
W_SCALE = 0.5
# nn.quantized.Conv2d default output scale / zero_point are 1.0 / 0 -> folded away.

# Conv2d hyper-parameters (dim == 2 branch).
C_IN, C_OUT = 16, 33
KH, KW = 3, 5
SH, SW = 2, 1
PH, PW = 4, 2

N_PAD = 128        # lane-dense padded output-channel dimension


def _round_up(x, m):
    return (x + m - 1) // m * m


def _device_kind():
    try:
        return jax.devices()[0].device_kind.lower()
    except Exception:
        return ""


def _select_config():
    """Returns (use_int8_mxu, num_grid_steps).

    int8 MXU path on v5*/v6* (integer MXU modes exist there); v7x has no int
    MXU -> bit-exact bf16 path.  Unknown chips also take the bf16 path (still
    bit-exact, just not the fastest).  v7x has 2 TensorCores per chip -> two
    balanced grid steps; every other supported chip is single-TC -> one step.
    """
    kind = _device_kind()
    is_v7 = ("v7" in kind) or ("7x" in kind)
    use_int8 = (not is_v7) and any(t in kind for t in ("v5", "v6"))
    num_steps = 2 if is_v7 else 1
    return use_int8, num_steps


def qconv_kernel_int8(patch_ref, w_ref, b_ref, out_ref):
    """int8 x int8 -> int32 MXU matmul, fused dequant + bias + requantize.

    patch_ref: (TM, K_PAD)  int8   centered quantized patches (q - 128), zero padded
    w_ref:     (K_PAD, 128) int8   qint8 weight, zero padded
    b_ref:     (1, 128)     f32    bias, zero padded
    out_ref:   (TM, 128)    uint8  requantized output (scale 1.0, zp 0)
    """
    acc = jnp.dot(patch_ref[...], w_ref[...], preferred_element_type=jnp.int32)
    y = acc.astype(jnp.float32) * (IN_SCALE * W_SCALE) + b_ref[...]
    q = jnp.clip(jnp.round(y), 0.0, 255.0)
    out_ref[...] = q.astype(jnp.int32).astype(jnp.uint8)


def qconv_kernel_bf16(patch_ref, w_ref, b_ref, out_ref):
    """bf16 MXU path (v7x / fallback).  IN_SCALE*W_SCALE is pre-folded into the
    bf16 weight (qw * 0.25, exact since qw has <= 8 significant bits), so the
    kernel body is just convert + matmul + bias + requantize.  f32 accumulation
    keeps the result bit-exact.

    patch_ref: (TM, K_PAD)  int8     centered quantized patches (q - 128)
    w_ref:     (K_PAD, 128) bfloat16 qw * IN_SCALE * W_SCALE
    b_ref:     (1, 128)     f32      bias
    out_ref:   (TM, 128)    uint8
    """
    dx = patch_ref[...].astype(jnp.bfloat16)
    acc = jnp.dot(dx, w_ref[...], preferred_element_type=jnp.float32)
    y = acc + b_ref[...]
    q = jnp.clip(jnp.round(y), 0.0, 255.0)
    out_ref[...] = q.astype(jnp.int32).astype(jnp.uint8)


def qconv2d(x, weight, bias):
    """x: (N, C_IN, H, W) float32 NCHW.  Returns (N, C_OUT, OH, OW) uint8
    (the int_repr of the PyTorch quint8 output)."""
    N, C, H, W = x.shape
    assert C == C_IN
    OH = (H + 2 * PH - KH) // SH + 1
    OW = (W + 2 * PW - KW) // SW + 1
    M = N * OH * OW
    K = C_IN * KH * KW                       # 240
    K_PAD = _round_up(K, 256)                # 256: one clean MXU pass

    use_int8, num_steps = _select_config()
    # int8/uint8 sublane packing needs multiples of 32.
    TM = _round_up(pl.cdiv(M, num_steps), 32)
    M_PAD = TM * num_steps

    # --- weight / bias prep (one-time, tiny) ---------------------------------
    qw = jnp.clip(jnp.round(weight / W_SCALE), -128.0, 127.0)     # qint8 values
    # K ordering (kh, kw, c) to match the channels-last im2col below.
    w2d = jnp.transpose(qw, (2, 3, 1, 0)).reshape(K, C_OUT)       # (K, C_OUT)
    w2d = jnp.pad(w2d, ((0, K_PAD - K), (0, N_PAD - C_OUT)))      # zero pad
    if use_int8:
        w2d = w2d.astype(jnp.int8)
    else:
        # Fold the full dequant scale into the weight: qw * 0.25, exact in bf16.
        w2d = (w2d * (IN_SCALE * W_SCALE)).astype(jnp.bfloat16)
    b2d = jnp.pad(bias.astype(jnp.float32), (0, N_PAD - C_OUT)).reshape(1, N_PAD)

    # --- input fake-quant BEFORE im2col, channels-last -----------------------
    # quint8 q = clip(round(x/s) + 128, 0, 255); keep the centered value q-128.
    x_nhwc = jnp.transpose(x, (0, 2, 3, 1))                      # tiny (8K fp32)
    qc = jnp.clip(jnp.round(x_nhwc / IN_SCALE), -128.0, 127.0).astype(jnp.int8)
    # Spatial zero-pad == input zero-point once centered.
    xp = jnp.pad(qc, ((0, 0), (PH, PH), (PW, PW), (0, 0)))

    # --- channels-last im2col: slices + concat along lanes, no relayout ------
    cols = []
    for kh in range(KH):
        for kw in range(KW):
            cols.append(xp[:, kh:kh + SH * (OH - 1) + 1:SH,
                           kw:kw + SW * (OW - 1) + 1:SW, :])
    patches = jnp.concatenate(cols, axis=-1)                 # (N, OH, OW, K)
    patches = patches.reshape(M, K)                          # K already lane-minor
    patches = jnp.pad(patches, ((0, M_PAD - M), (0, K_PAD - K)))   # int8 zero pad

    kernel = qconv_kernel_int8 if use_int8 else qconv_kernel_bf16

    out = pl.pallas_call(
        kernel,
        out_shape=jax.ShapeDtypeStruct((M_PAD, N_PAD), jnp.uint8),
        grid=(num_steps,),
        in_specs=[
            pl.BlockSpec((TM, K_PAD), lambda i: (i, 0)),
            pl.BlockSpec((K_PAD, N_PAD), lambda i: (0, 0)),
            pl.BlockSpec((1, N_PAD), lambda i: (0, 0)),
        ],
        out_specs=pl.BlockSpec((TM, N_PAD), lambda i: (i, 0)),
        compiler_params=pltpu.CompilerParams(
            dimension_semantics=("parallel",)),
    )(patches, w2d, b2d)

    # Strip padding, reshape back to NCHW (tiny uint8 relayout; a consumer that
    # accepts NHWC could take out[:M, :C_OUT].reshape(N, OH, OW, C_OUT) directly).
    out = out[:M, :C_OUT].reshape(N, OH, OW, C_OUT).transpose(0, 3, 1, 2)
    return out


def _reference(x, weight, bias):
    """Pure-JAX reference of the quantized conv (exact at these value ranges)."""
    x_dq = jnp.clip(jnp.round(x / IN_SCALE), -128.0, 127.0) * IN_SCALE
    w_dq = jnp.clip(jnp.round(weight / W_SCALE), -128.0, 127.0) * W_SCALE
    y = jax.lax.conv_general_dilated(
        x_dq, w_dq, window_strides=(SH, SW), padding=((PH, PH), (PW, PW)),
        dimension_numbers=("NCHW", "OIHW", "NCHW"),
        precision=jax.lax.Precision.HIGHEST)
    y = y + bias.reshape(1, C_OUT, 1, 1)
    return jnp.clip(jnp.round(y), 0.0, 255.0).astype(jnp.uint8)


if __name__ == "__main__":
    key = jax.random.PRNGKey(0)
    kx, kw = jax.random.split(key)

    # Small deterministic inputs consistent with the dim=2 module.
    x = jax.random.normal(kx, (2, C_IN, 16, 16), dtype=jnp.float32) * 2.0
    weight = jax.random.normal(kw, (C_OUT, C_IN, KH, KW), dtype=jnp.float32)
    bias = jnp.arange(C_OUT, dtype=jnp.float32) - 16.0

    y = qconv2d(x, weight, bias)
    jax.block_until_ready(y)

    expected_oh = (16 + 2 * PH - KH) // SH + 1   # 11
    expected_ow = (16 + 2 * PW - KW) // SW + 1   # 16
    assert y.shape == (2, C_OUT, expected_oh, expected_ow), y.shape
    assert y.dtype == jnp.uint8

    y_ref = _reference(x, weight, bias)
    assert bool(jnp.array_equal(y, y_ref)), "kernel output mismatch vs reference"

    print("KERNEL_OK")
</pallas_src>

<mosaic_0001>
module attributes {stable_mosaic.version = 11 : i64} {
  func.func @qconv_kernel_bf16(%arg0: i32, %arg1: memref<352x256xi8, #tpu.memory_space<vmem>>, %arg2: memref<256x128xbf16, #tpu.memory_space<vmem>>, %arg3: memref<1x128xf32, #tpu.memory_space<vmem>>, %arg4: memref<352x128xi8, #tpu.memory_space<vmem>>) attributes {dimension_semantics = [#tpu.dimension_semantics<parallel>], iteration_bounds = array<i64: 1>, scalar_prefetch = 0 : i64, scratch_operands = 0 : i64, tpu.core_type = #tpu.core_type<tc>, window_params = [{transform_indices = @transform_0, window_bounds = array<i64: 352, 256>}, {pipeline_mode = #tpu.pipeline_mode<synchronous>, transform_indices = @transform_1, window_bounds = array<i64: 256, 128>}, {pipeline_mode = #tpu.pipeline_mode<synchronous>, transform_indices = @transform_2, window_bounds = array<i64: 1, 128>}, {transform_indices = @transform_3, window_bounds = array<i64: 352, 128>}]} {
    %c0 = arith.constant 0 : index
    %c0_0 = arith.constant 0 : index
    %0 = vector.load %arg1[%c0, %c0_0] : memref<352x256xi8, #tpu.memory_space<vmem>>, vector<352x256xi8>
    %1 = arith.sitofp %0 : vector<352x256xi8> to vector<352x256xbf16>
    %c0_1 = arith.constant 0 : index
    %c0_2 = arith.constant 0 : index
    %2 = vector.load %arg2[%c0_1, %c0_2] : memref<256x128xbf16, #tpu.memory_space<vmem>>, vector<256x128xbf16>
    %cst = arith.constant dense<0.000000e+00> : vector<352x128xf32>
    %3 = tpu.matmul %1, %2, %cst {dimension_numbers = #tpu.dot_dimension_numbers<[1], [0], [0], [1], [0, 0, 1, 1], [], []>} : vector<352x256xbf16>, vector<256x128xbf16>, vector<352x128xf32> -> vector<352x128xf32>
    %c0_3 = arith.constant 0 : index
    %c0_4 = arith.constant 0 : index
    %4 = vector.load %arg3[%c0_3, %c0_4] : memref<1x128xf32, #tpu.memory_space<vmem>>, vector<1x128xf32>
    %5 = vector.broadcast %4 : vector<1x128xf32> to vector<352x128xf32>
    %6 = arith.addf %3, %5 : vector<352x128xf32>
    %7 = math.roundeven %6 : vector<352x128xf32>
    %cst_5 = arith.constant 0.000000e+00 : f32
    %cst_6 = arith.constant 2.550000e+02 : f32
    %8 = vector.broadcast %cst_5 : f32 to vector<352x128xf32>
    %9 = arith.maximumf %8, %7 : vector<352x128xf32>
    %10 = vector.broadcast %cst_6 : f32 to vector<352x128xf32>
    %11 = arith.minimumf %10, %9 : vector<352x128xf32>
    %12 = arith.fptosi %11 : vector<352x128xf32> to vector<352x128xi32>
    %13 = arith.trunci %12 : vector<352x128xi32> to vector<352x128xi8>
    %c0_7 = arith.constant 0 : index
    %c0_8 = arith.constant 0 : index
    %14 = vector.load %arg4[%c0_7, %c0_8] : memref<352x128xi8, #tpu.memory_space<vmem>>, vector<352x128xi8>
    tpu.vector_store %arg4[%c0_7, %c0_8], %13 {strides = array<i32>} : memref<352x128xi8, #tpu.memory_space<vmem>>, vector<352x128xi8>,
    return
  }
  func.func @transform_0(%arg0: i32) -> (i32, i32) {
    %c0_i32 = arith.constant 0 : i32
    %c0_i32_0 = arith.constant 0 : i32
    return %arg0, %c0_i32 : i32, i32
  }
  func.func @transform_1(%arg0: i32) -> (i32, i32) {
    %c0_i32 = arith.constant 0 : i32
    %c0_i32_0 = arith.constant 0 : i32
    %c0_i32_1 = arith.constant 0 : i32
    return %c0_i32, %c0_i32_0 : i32, i32
  }
  func.func @transform_2(%arg0: i32) -> (i32, i32) {
    %c0_i32 = arith.constant 0 : i32
    %c0_i32_0 = arith.constant 0 : i32
    %c0_i32_1 = arith.constant 0 : i32
    return %c0_i32, %c0_i32_0 : i32, i32
  }
  func.func @transform_3(%arg0: i32) -> (i32, i32) {
    %c0_i32 = arith.constant 0 : i32
    %c0_i32_0 = arith.constant 0 : i32
    return %arg0, %c0_i32 : i32, i32
  }
}

</mosaic_0001>

<bundles_post_ra>
// kernel: tpu_custom_call.1
= control target key start
LH: loop header
LB: loop body
LE: loop exit
PB: predicated region body
PF: predicated region fallthrough
CT: control target
= control target key end

     0   :  { %8 = vsyncpa [#allocation3], 0  ;;  %s1232_s0 = inlined_call_operand.hbm [shape: s8[352,256], index: 0, kind: input, shape index: {}]   ;;  %s1233_s1 = inlined_call_operand.hbm [shape: bf16[256,128], index: 1, kind: input, shape index: {}]   ;;  %s1234_s2 = inlined_call_operand.vmem [shape: f32[1,128], index: 2, kind: input, shape index: {}]   ;;  %s1235_s3 = inlined_call_operand.hbm [shape: u8[352,128], index: 3, kind: output, shape index: {}]  }
   0x1   :  { %9 = vsyncpa [#allocation6], 0 }
   0x2   :  { %10 = vsyncpa [#allocation4], 0  ;;  %s1097_s12 = smov [#allocation2]  }
   0x3   :  { %s16_s13 = sshll.u32 %s1097_s12, 4  ;;  %s17_s13 = int_to_ptr.vmem [resolvable:$true] %s16_s13 }
   0x4   :  { %s1039_s14 = scalar_lea.vmem %s17_s13, 2816  ;;  %p1044_p1 = scmp.lt.s32.totalorder %s17_s13, %s17_s13 }
   0x5   :  { %p1040_p0 = scmp.ne.s32.totalorder %s17_s13, %s1039_s14  ;;  %p1045_p2 = scmp.lt.s32.totalorder %s1039_s14, %s1039_s14 }
   0x7   :  { %p1046_p3 = por %p1045_p2, %p1044_p1 }
   0x9   :  { %p1047_p4 = pnand %p1046_p3, %p1040_p0 }
   0xb   :  { %1050 = shalt.err (!%p1047_p4)
}
   0xc   :  { %s1098_s15 = smov 256   ;;  %s1099_s16 = smov 16  }
   0xd   :  { %22 = dma.hbm_to_vmem [thread:$0]  %s1232_s0, 2816, %s17_s13, [#allocation3], %s1098_s15, %s1098_s15, %s1099_s16  }
   0xe   :  { %s1100_s19 = smov [#allocation5]  }
   0xf   :  { %s28_s20 = sshll.u32 %s1100_s19, 4  ;;  %s29_s20 = int_to_ptr.vmem [resolvable:$true] %s28_s20 }
  0x10   :  { %s1059_s21 = scalar_lea.vmem %s29_s20, 2048  ;;  %p1064_p6 = scmp.lt.s32.totalorder %s29_s20, %s29_s20 }
  0x11   :  { %p1060_p5 = scmp.ne.s32.totalorder %s29_s20, %s1059_s21  ;;  %p1065_p7 = scmp.lt.s32.totalorder %s1059_s21, %s1059_s21 }
  0x13   :  { %p1066_p8 = por %p1065_p7, %p1064_p6 }
  0x15   :  { %p1067_p9 = pnand %p1066_p8, %p1060_p5 }
  0x17   :  { %1070 = shalt.err (!%p1067_p9)
}
  0x18   :  { %s1101_s22 = smov 64   ;;  %s1102_s23 = smov 4  }
  0x19   :  { %34 = dma.hbm_to_vmem [thread:$0]  %s1233_s1, 2048, %s29_s20, [#allocation6], %s1101_s22, %s1101_s22, %s1102_s23  }
  0x1a   :  { %1091 = dma.done.wait [#allocation3], 2816  }
  0x1b   :  { %1092 = vsyncadd [#allocation3], 4294964480 }
  0x1c   :  { %1093 = dma.done.wait [#allocation6], 2048  }
  0x1d   :  { %1094 = vsyncadd [#allocation6], 4294965248  ;;  %v1103_v0 = vmov 0   ;;  %v1015_v1 = vld [vmem:[#allocation5 + $0x38] sm:$0xff]   ;;  %v1016_v2 = vld [vmem:[#allocation5 + $0x30] sm:$0xff]  }
  0x1e   :  { %245 = vmatprep.subr.bf16.mxu0 %v1103_v0  ;;  %841 = vmatprep.subr.bf16.mxu1 %v1103_v0  ;;  %v1017_v3 = vld [vmem:[#allocation5 + $0x28] sm:$0xff]   ;;  %v1018_v4 = vld [vmem:[#allocation5 + $0x20] sm:$0xff]   ;;  %v1019_v5 = vld [vmem:[#allocation5 + $0x18] sm:$0xff]  }
  0x1f   :  { %246 = vmatpush1.bf16.msra.mxu0 %v1015_v1  ;;  %857 = vmatpush1.bf16.msra.mxu1 %v1015_v1  ;;  %v1143_v6 = vld [vmem:[#allocation2 + $0x8] sm:$0xff]  ;;  %v1145_v7 = vld [vmem:[#allocation2 + $0x58] sm:$0xff]  ;;  %v1020_v10 = vld [vmem:[#allocation5 + $0x10] sm:$0xff]  }
  0x20   :  { %247 = vmatprep.subr.bf16.mxu0 %v1103_v0  ;;  %842 = vmatprep.subr.bf16.mxu1 %v1103_v0  ;;  %v67_v8 = vunpack.c.l.s8.bf16 %v1143_v6  ;;  %v89_v9 = vunpack.c.h.s8.bf16 %v1145_v7  ;;  %v1021_v11 = vld [vmem:[#allocation5 + $0x8] sm:$0xff]   ;;  %v1022_v12 = vld [vmem:[#allocation5] sm:$0xff]   ;;  %v1023_v13 = vld [vmem:[#allocation5 + $0x78] sm:$0xff]   ;;  %v69_v26 = vunpack.c.h.s8.bf16 %v1143_v6 }
  0x21   :  { %v1024_v14 = vld [vmem:[#allocation5 + $0x70] sm:$0xff]   ;;  %v1025_v15 = vld [vmem:[#allocation5 + $0x68] sm:$0xff]   ;;  %v1026_v16 = vld [vmem:[#allocation5 + $0x60] sm:$0xff]  }
  0x22   :  { %277 = vmatprep.mubr.bf16.mxu0 %v67_v8  ;;  %365 = vmatprep.mubr.bf16.mxu1 %v89_v9  ;;  %v1027_v17 = vld [vmem:[#allocation5 + $0x58] sm:$0xff]   ;;  %v1028_v18 = vld [vmem:[#allocation5 + $0x50] sm:$0xff]   ;;  %v1029_v19 = vld [vmem:[#allocation5 + $0x48] sm:$0xff]  }
  0x23   :  { %248 = vmatpush1.bf16.msra.mxu0 %v1016_v2  ;;  %858 = vmatpush1.bf16.msra.mxu1 %v1016_v2  ;;  %v1030_v20 = vld [vmem:[#allocation5 + $0x40] sm:$0xff]   ;;  %v44_v21 = vld [vmem:[#allocation2] sm:$0xff]  ;;  %v57_v23 = vld [vmem:[#allocation2 + $0x68] sm:$0xff] }
  0x24   :  { %249 = vmatprep.subr.bf16.mxu0 %v1103_v0  ;;  %843 = vmatprep.subr.bf16.mxu1 %v1103_v0  ;;  %v1169_v22 = vld [vmem:[#allocation2 + $0x50] sm:$0xff]  ;;  %v66_v24 = vunpack.c.l.s8.bf16 %v44_v21  ;;  %v91_v27 = vunpack.c.l.s8.bf16 %v57_v23  ;;  %v56_v28 = vld [vmem:[#allocation2 + $0x60] sm:$0xff]  ;;  %v47_v29 = vld [vmem:[#allocation2 + $0x18] sm:$0xff]  ;;  %v68_v30 = vunpack.c.h.s8.bf16 %v44_v21  ;;  %v93_v33 = vunpack.c.h.s8.bf16 %v57_v23 }
  0x25   :  { %v88_v25 = vunpack.c.h.s8.bf16 %v1169_v22  ;;  %v90_v31 = vunpack.c.l.s8.bf16 %v56_v28  ;;  %v71_v32 = vunpack.c.l.s8.bf16 %v47_v29  ;;  %v46_v34 = vld [vmem:[#allocation2 + $0x10] sm:$0xff]  ;;  %v59_v35 = vld [vmem:[#allocation2 + $0x78] sm:$0xff]  ;;  %v92_v37 = vunpack.c.h.s8.bf16 %v56_v28  ;;  %v49_v41 = vld [vmem:[#allocation2 + $0x28] sm:$0xff] }
  0x26   :  { %v70_v36 = vunpack.c.l.s8.bf16 %v46_v34  ;;  %v73_v38 = vunpack.c.h.s8.bf16 %v47_v29  ;;  %v95_v39 = vunpack.c.l.s8.bf16 %v59_v35  ;;  %v58_v40 = vld [vmem:[#allocation2 + $0x70] sm:$0xff]  ;;  %v72_v42 = vunpack.c.h.s8.bf16 %v46_v34  ;;  %v48_v46 = vld [vmem:[#allocation2 + $0x20] sm:$0xff]  ;;  %v61_v47 = vld [vmem:[#allocation2 + $0x88] sm:$0xff] }
  0x27   :  { %250 = vmatpush1.bf16.msra.mxu0 %v1017_v3  ;;  %859 = vmatpush1.bf16.msra.mxu1 %v1017_v3  ;;  %v94_v43 = vunpack.c.l.s8.bf16 %v58_v40  ;;  %v75_v44 = vunpack.c.l.s8.bf16 %v49_v41  ;;  %v97_v45 = vunpack.c.h.s8.bf16 %v59_v35  ;;  %v74_v48 = vunpack.c.l.s8.bf16 %v48_v46  ;;  %v60_v52 = vld [vmem:[#allocation2 + $0x80] sm:$0xff]  ;;  %v51_v53 = vld [vmem:[#allocation2 + $0x38] sm:$0xff]  ;;  %v50_v58 = vld [vmem:[#allocation2 + $0x30] sm:$0xff] }
  0x28   :  { %251 = vmatprep.subr.bf16.mxu0 %v1103_v0  ;;  %844 = vmatprep.subr.bf16.mxu1 %v1103_v0  ;;  %v96_v49 = vunpack.c.h.s8.bf16 %v58_v40  ;;  %v77_v50 = vunpack.c.h.s8.bf16 %v49_v41  ;;  %v99_v51 = vunpack.c.l.s8.bf16 %v61_v47  ;;  %v76_v54 = vunpack.c.h.s8.bf16 %v48_v46  ;;  %v63_v59 = vld [vmem:[#allocation2 + $0x98] sm:$0xff]  ;;  %v53_v1 = vld [vmem:[#allocation2 + $0x48] sm:$0xff]  ;;  %v52_v6 = vld [vmem:[#allocation2 + $0x40] sm:$0xff] }
  0x29   :  { %v98_v55 = vunpack.c.l.s8.bf16 %v60_v52  ;;  %v79_v56 = vunpack.c.l.s8.bf16 %v51_v53  ;;  %v101_v57 = vunpack.c.h.s8.bf16 %v61_v47  ;;  %v78_v60 = vunpack.c.l.s8.bf16 %v50_v58  ;;  %v65_v8 = vld [vmem:[#allocation2 + $0xa8] sm:$0xff] }
  0x2a   :  { %v100_v61 = vunpack.c.h.s8.bf16 %v60_v52  ;;  %v81_v62 = vunpack.c.h.s8.bf16 %v51_v53  ;;  %v103_v63 = vunpack.c.l.s8.bf16 %v63_v59  ;;  %v80_v2 = vunpack.c.h.s8.bf16 %v50_v58 }
  0x2b   :  { %252 = vmatpush1.bf16.msra.mxu0 %v1018_v4  ;;  %860 = vmatpush1.bf16.msra.mxu1 %v1018_v4  ;;  %v83_v4 = vunpack.c.l.s8.bf16 %v53_v1  ;;  %v82_v9 = vunpack.c.l.s8.bf16 %v52_v6 }
  0x2c   :  { %253 = vmatprep.subr.bf16.mxu0 %v1103_v0  ;;  %845 = vmatprep.subr.bf16.mxu1 %v1103_v0 }
  0x2f   :  { %254 = vmatpush1.bf16.msra.mxu0 %v1019_v5  ;;  %861 = vmatpush1.bf16.msra.mxu1 %v1019_v5  ;;  %v105_v5 = vunpack.c.h.s8.bf16 %v63_v59 }
  0x30   :  { %255 = vmatprep.subr.bf16.mxu0 %v1103_v0  ;;  %846 = vmatprep.subr.bf16.mxu1 %v1103_v0 }
  0x33   :  { %256 = vmatpush1.bf16.msra.mxu0 %v1020_v10  ;;  %862 = vmatpush1.bf16.msra.mxu1 %v1020_v10 }
  0x34   :  { %257 = vmatprep.subr.bf16.mxu0 %v1103_v0  ;;  %847 = vmatprep.subr.bf16.mxu1 %v1103_v0 }
  0x37   :  { %258 = vmatpush1.bf16.msra.mxu0 %v1021_v11  ;;  %863 = vmatpush1.bf16.msra.mxu1 %v1021_v11  ;;  %v85_v11 = vunpack.c.h.s8.bf16 %v53_v1 }
  0x38   :  { %259 = vmatprep.subr.bf16.mxu0 %v1103_v0  ;;  %848 = vmatprep.subr.bf16.mxu1 %v1103_v0 }
  0x3b   :  { %260 = vmatpush1.bf16.msra.mxu0 %v1022_v12  ;;  %864 = vmatpush1.bf16.msra.mxu1 %v1022_v12  ;;  %v107_v12 = vunpack.c.l.s8.bf16 %v65_v8 }
  0x3c   :  { %261 = vmatprep.subr.bf16.mxu0 %v1103_v0  ;;  %849 = vmatprep.subr.bf16.mxu1 %v1103_v0 }
  0x3f   :  { %262 = vmatpush2.bf16.msra.mxu0 %v1023_v13  ;;  %865 = vmatpush2.bf16.msra.mxu1 %v1023_v13  ;;  %v64_v13 = vld [vmem:[#allocation2 + $0xa0] sm:$0xff] }
  0x40   :  { %263 = vmatprep.subr.bf16.mxu0 %v1103_v0  ;;  %850 = vmatprep.subr.bf16.mxu1 %v1103_v0 }
  0x43   :  { %264 = vmatpush2.bf16.msra.mxu0 %v1024_v14  ;;  %866 = vmatpush2.bf16.msra.mxu1 %v1024_v14  ;;  %v84_v14 = vunpack.c.h.s8.bf16 %v52_v6 }
  0x44   :  { %265 = vmatprep.subr.bf16.mxu0 %v1103_v0  ;;  %851 = vmatprep.subr.bf16.mxu1 %v1103_v0 }
  0x47   :  { %266 = vmatpush2.bf16.msra.mxu0 %v1025_v15  ;;  %867 = vmatpush2.bf16.msra.mxu1 %v1025_v15  ;;  %v106_v15 = vunpack.c.l.s8.bf16 %v64_v13 }
  0x48   :  { %267 = vmatprep.subr.bf16.mxu0 %v1103_v0  ;;  %852 = vmatprep.subr.bf16.mxu1 %v1103_v0 }
  0x4b   :  { %268 = vmatpush2.bf16.msra.mxu0 %v1026_v16  ;;  %868 = vmatpush2.bf16.msra.mxu1 %v1026_v16  ;;  %v87_v16 = vunpack.c.l.s8.bf16 %v1145_v7 }
  0x4c   :  { %269 = vmatprep.subr.bf16.mxu0 %v1103_v0  ;;  %853 = vmatprep.subr.bf16.mxu1 %v1103_v0 }
  0x4f   :  { %270 = vmatpush2.bf16.msra.mxu0 %v1027_v17  ;;  %869 = vmatpush2.bf16.msra.mxu1 %v1027_v17  ;;  %v109_v17 = vunpack.c.h.s8.bf16 %v65_v8 }
  0x50   :  { %271 = vmatprep.subr.bf16.mxu0 %v1103_v0  ;;  %854 = vmatprep.subr.bf16.mxu1 %v1103_v0 }
  0x53   :  { %272 = vmatpush2.bf16.msra.mxu0 %v1028_v18  ;;  %870 = vmatpush2.bf16.msra.mxu1 %v1028_v18  ;;  %v86_v18 = vunpack.c.l.s8.bf16 %v1169_v22 }
  0x54   :  { %273 = vmatprep.subr.bf16.mxu0 %v1103_v0  ;;  %855 = vmatprep.subr.bf16.mxu1 %v1103_v0 }
  0x57   :  { %274 = vmatpush2.bf16.msra.mxu0 %v1029_v19  ;;  %871 = vmatpush2.bf16.msra.mxu1 %v1029_v19  ;;  %v108_v19 = vunpack.c.h.s8.bf16 %v64_v13 }
  0x58   :  { %275 = vmatprep.subr.bf16.mxu0 %v1103_v0  ;;  %856 = vmatprep.subr.bf16.mxu1 %v1103_v0  ;;  %v62_v0 = vld [vmem:[#allocation2 + $0x90] sm:$0xff] }
  0x59   :  { %v102_v3 = vunpack.c.l.s8.bf16 %v62_v0  ;;  %v104_v10 = vunpack.c.h.s8.bf16 %v62_v0 }
  0x5b   :  { %276 = vmatpush2.bf16.msra.mxu0 %v1030_v20  ;;  %872 = vmatpush2.bf16.msra.mxu1 %v1030_v20  ;;  %v1180_v20 = vld [vmem:[%s1234_s2] ss:$0 sm:$0xff]  ;;  %s1104_s2 = smov [#allocation7]  }
  0x5c   :  { %s679_s26 = sshll.u32 %s1104_s2, 4  ;;  %s680_s26 = int_to_ptr.vmem [resolvable:$true] %s679_s26 }
  0x5d   :  { %s1071_s27 = scalar_lea.vmem %s680_s26, 1408  ;;  %p1076_p11 = scmp.lt.s32.totalorder %s680_s26, %s680_s26 }
  0x5e   :  { %278 = vmatmul.mubr.bf16.vlgmr.msra.gmra.mxu0 %v66_v24  ;;  %366 = vmatmul.mubr.bf16.vlgmr.msra.gmra.mxu1 %v88_v25  ;;  %p1072_p10 = scmp.ne.s32.totalorder %s680_s26, %s1071_s27  ;;  %p1077_p12 = scmp.lt.s32.totalorder %s1071_s27, %s1071_s27 }
  0x5f   :  { %285 = vmatprep.mubr.bf16.mxu0 %v69_v26  ;;  %373 = vmatprep.mubr.bf16.mxu1 %v91_v27 }
  0x60   :  { %p1078_p13 = por %p1077_p12, %p1076_p11 }
  0x62   :  { %p1079_p0 = pnand %p1078_p13, %p1072_p10 }
  0x66   :  { %286 = vmatmul.mubr.bf16.gmra.mxu0 %v68_v30  ;;  %374 = vmatmul.mubr.bf16.gmra.mxu1 %v90_v31 }
  0x67   :  { %293 = vmatprep.mubr.bf16.mxu0 %v71_v32  ;;  %381 = vmatprep.mubr.bf16.mxu1 %v93_v33 }
  0x6e   :  { %294 = vmatmul.mubr.bf16.gmra.mxu0 %v70_v36  ;;  %382 = vmatmul.mubr.bf16.gmra.mxu1 %v92_v37 }
  0x6f   :  { %301 = vmatprep.mubr.bf16.mxu0 %v73_v38  ;;  %389 = vmatprep.mubr.bf16.mxu1 %v95_v39 }
  0x76   :  { %302 = vmatmul.mubr.bf16.gmra.mxu0 %v72_v42  ;;  %390 = vmatmul.mubr.bf16.gmra.mxu1 %v94_v43 }
  0x77   :  { %309 = vmatprep.mubr.bf16.mxu0 %v75_v44  ;;  %397 = vmatprep.mubr.bf16.mxu1 %v97_v45 }
  0x7e   :  { %310 = vmatmul.mubr.bf16.gmra.mxu0 %v74_v48  ;;  %398 = vmatmul.mubr.bf16.gmra.mxu1 %v96_v49 }
  0x7f   :  { %317 = vmatprep.mubr.bf16.mxu0 %v77_v50  ;;  %405 = vmatprep.mubr.bf16.mxu1 %v99_v51 }
  0x86   :  { %318 = vmatmul.mubr.bf16.gmra.mxu0 %v76_v54  ;;  %406 = vmatmul.mubr.bf16.gmra.mxu1 %v98_v55 }
  0x87   :  { %325 = vmatprep.mubr.bf16.mxu0 %v79_v56  ;;  %413 = vmatprep.mubr.bf16.mxu1 %v101_v57 }
  0x8e   :  { %326 = vmatmul.mubr.bf16.gmra.mxu0 %v78_v60  ;;  %414 = vmatmul.mubr.bf16.gmra.mxu1 %v100_v61 }
  0x8f   :  { %333 = vmatprep.mubr.bf16.mxu0 %v81_v62  ;;  %421 = vmatprep.mubr.bf16.mxu1 %v103_v63 }
  0x96   :  { %334 = vmatmul.mubr.bf16.gmra.mxu0 %v80_v2  ;;  %422 = vmatmul.mubr.bf16.gmra.mxu1 %v102_v3 }
  0x97   :  { %341 = vmatprep.mubr.bf16.mxu0 %v83_v4  ;;  %429 = vmatprep.mubr.bf16.mxu1 %v105_v5 }
  0x9e   :  { %342 = vmatmul.mubr.bf16.gmra.mxu0 %v82_v9  ;;  %430 = vmatmul.mubr.bf16.gmra.mxu1 %v104_v10 }
  0x9f   :  { %349 = vmatprep.mubr.bf16.mxu0 %v85_v11  ;;  %437 = vmatprep.mubr.bf16.mxu1 %v107_v12 }
  0xa6   :  { %350 = vmatmul.mubr.bf16.gmra.mxu0 %v84_v14  ;;  %438 = vmatmul.mubr.bf16.gmra.mxu1 %v106_v15 }
  0xa7   :  { %357 = vmatprep.mubr.bf16.mxu0 %v87_v16  ;;  %445 = vmatprep.mubr.bf16.mxu1 %v109_v17 }
  0xae   :  { %358 = vmatmul.mubr.bf16.gmra.mxu0 %v86_v18  ;;  %446 = vmatmul.mubr.bf16.gmra.mxu1 %v108_v19 }
 0x11e   :  { %v279_v21 = vpop.f32.mrf.mxu0  ;;  %v367_v23 = vpop.f32.mrf.mxu1 }
 0x11f   :  { %v368_v24 = vadd.f32 %v1180_v20, %v367_v23  ;;  %v280_v34 = vadd.f32 %v1180_v20, %v279_v21 }
 0x120   :  { %v281_v7 = vpop.f32.mrf.mxu0  ;;  %v369_v25 = vpop.f32.mrf.mxu1 }
 0x121   :  { %v775_v26 = vmax.f32 %v368_v24, 0.0  ;;  %v709_v44 = vmax.f32 %v280_v34, 0.0 }
 0x122   :  { %v282_v27 = vpop.f32.mrf.mxu0  ;;  %v370_v28 = vpop.f32.mrf.mxu1 }
 0x123   :  { %v371_v29 = vadd.f32 %v1180_v20, %v370_v28  ;;  %v283_v22 = vadd.f32 %v1180_v20, %v282_v27  ;;  %v776_v32 = vmin.f32 %v775_v26, 255.0  ;;  %v710_v55 = vmin.f32 %v709_v44, 255.0 }
 0x124   :  { %v284_v30 = vpop.f32.mrf.mxu0  ;;  %v372_v31 = vpop.f32.mrf.mxu1 }
 0x125   :  { %v778_v33 = vmax.f32 %v371_v29, 0.0  ;;  %v712_v39 = vmax.f32 %v283_v22, 0.0  ;;  %v941_v42 = vcvt.f32.s32 %v776_v32  ;;  %v875_v4 = vcvt.f32.s32 %v710_v55 }
 0x126   :  { %v287_v35 = vpop.f32.mrf.mxu0  ;;  %v375_v36 = vpop.f32.mrf.mxu1 }
 0x127   :  { %v779_v37 = vmin.f32 %v778_v33, 255.0  ;;  %v288_v38 = vadd.f32 %v1180_v20, %v287_v35  ;;  %v713_v49 = vmin.f32 %v712_v39, 255.0  ;;  %v376_v54 = vadd.f32 %v1180_v20, %v375_v36 }
 0x128   :  { %v289_v40 = vpop.f32.mrf.mxu0  ;;  %v377_v41 = vpop.f32.mrf.mxu1 }
 0x129   :  { %v944_v43 = vcvt.f32.s32 %v779_v37  ;;  %v715_v45 = vmax.f32 %v288_v38, 0.0  ;;  %v878_v62 = vcvt.f32.s32 %v713_v49  ;;  %v781_v2 = vmax.f32 %v376_v54, 0.0 }
 0x12a   :  { %v290_v46 = vpop.f32.mrf.mxu0  ;;  %v378_v47 = vpop.f32.mrf.mxu1 }
 0x12b   :  { %v1187_v48 = vpack.c.b16 %v944_v43, %v941_v42  ;;  %v291_v50 = vadd.f32 %v1180_v20, %v290_v46  ;;  %v379_v51 = vadd.f32 %v1180_v20, %v378_v47  ;;  %v716_v56 = vmin.f32 %v715_v45, 255.0 }
 0x12c   :  { %v292_v52 = vpop.f32.mrf.mxu0  ;;  %v380_v53 = vpop.f32.mrf.mxu1  ;;  %v630_v12 = vpack.c.b16 %v878_v62, %v875_v4  ;;  %v782_v17 = vmin.f32 %v781_v2, 255.0 }
 0x12d   :  { %v718_v57 = vmax.f32 %v291_v50, 0.0  ;;  %v784_v60 = vmax.f32 %v379_v51, 0.0  ;;  %v881_v5 = vcvt.f32.s32 %v716_v56 }
 0x12e   :  { %v295_v58 = vpop.f32.mrf.mxu0  ;;  %v383_v59 = vpop.f32.mrf.mxu1  ;;  %v947_v30 = vcvt.f32.s32 %v782_v17 }
 0x12f   :  { %v384_v61 = vadd.f32 %v1180_v20, %v383_v59  ;;  %v719_v63 = vmin.f32 %v718_v57, 255.0  ;;  %v785_v10 = vmin.f32 %v784_v60, 255.0  ;;  %v296_v23 = vadd.f32 %v1180_v20, %v295_v58 }
 0x130   :  { %v297_v0 = vpop.f32.mrf.mxu0  ;;  %v385_v1 = vpop.f32.mrf.mxu1 }
 0x131   :  { %v787_v3 = vmax.f32 %v384_v61, 0.0  ;;  %v884_v6 = vcvt.f32.s32 %v719_v63  ;;  %v950_v25 = vcvt.f32.s32 %v785_v10  ;;  %v721_v33 = vmax.f32 %v296_v23, 0.0 }
 0x132   :  { %v298_v8 = vpop.f32.mrf.mxu0  ;;  %v386_v9 = vpop.f32.mrf.mxu1 }
 0x133   :  { %v387_v11 = vadd.f32 %v1180_v20, %v386_v9  ;;  %v631_v13 = vpack.c.b16 %v884_v6, %v881_v5  ;;  %v299_v14 = vadd.f32 %v1180_v20, %v298_v8  ;;  %v788_v18 = vmin.f32 %v787_v3, 255.0 }
 0x134   :  { %v300_v15 = vpop.f32.mrf.mxu0  ;;  %v388_v16 = vpop.f32.mrf.mxu1  ;;  %v648_v37 = vpack.c.b16 %v950_v25, %v947_v30  ;;  %v722_v46 = vmin.f32 %v721_v33, 255.0 }
 0x135   :  { %v790_v19 = vmax.f32 %v387_v11, 0.0  ;;  %v632_v21 = vpack.c.b8 %v631_v13, %v630_v12  ;;  %v724_v28 = vmax.f32 %v299_v14, 0.0  ;;  %v953_v31 = vcvt.f32.s32 %v788_v18 }
 0x136   :  { %v303_v24 = vpop.f32.mrf.mxu0  ;;  %v391_v7 = vpop.f32.mrf.mxu1  ;;  %v887_v60 = vcvt.f32.s32 %v722_v46 }
 0x137   :  { %v791_v26 = vmin.f32 %v790_v19, 255.0  ;;  %v304_v27 = vadd.f32 %v1180_v20, %v303_v24  ;;  %663 = vst [vmem:[#allocation7] sm:$0xff] %v632_v21  ;;  %v725_v39 = vmin.f32 %v724_v28, 255.0  ;;  %v392_v45 = vadd.f32 %v1180_v20, %v391_v7 }
 0x138   :  { %v305_v29 = vpop.f32.mrf.mxu0  ;;  %v393_v22 = vpop.f32.mrf.mxu1 }
 0x139   :  { %v956_v32 = vcvt.f32.s32 %v791_v26  ;;  %v727_v34 = vmax.f32 %v304_v27, 0.0  ;;  %v890_v54 = vcvt.f32.s32 %v725_v39  ;;  %v793_v58 = vmax.f32 %v392_v45, 0.0 }
 0x13a   :  { %v306_v35 = vpop.f32.mrf.mxu0  ;;  %v394_v36 = vpop.f32.mrf.mxu1 }
 0x13b   :  { %v649_v38 = vpack.c.b16 %v956_v32, %v953_v31  ;;  %v307_v40 = vadd.f32 %v1180_v20, %v306_v35  ;;  %v395_v41 = vadd.f32 %v1180_v20, %v394_v36  ;;  %v728_v47 = vmin.f32 %v727_v34, 255.0 }
 0x13c   :  { %v308_v42 = vpop.f32.mrf.mxu0  ;;  %v396_v43 = vpop.f32.mrf.mxu1  ;;  %v633_v3 = vpack.c.b16 %v890_v54, %v887_v60  ;;  %v794_v9 = vmin.f32 %v793_v58, 255.0 }
 0x13d   :  { %v650_v44 = vpack.c.b8 %v649_v38, %v648_v37  ;;  %v730_v49 = vmax.f32 %v307_v40, 0.0  ;;  %v796_v52 = vmax.f32 %v395_v41, 0.0  ;;  %v893_v61 = vcvt.f32.s32 %v728_v47 }
 0x13e   :  { %v311_v50 = vpop.f32.mrf.mxu0  ;;  %v399_v51 = vpop.f32.mrf.mxu1  ;;  %v959_v24 = vcvt.f32.s32 %v794_v9 }
 0x13f   :  { %669 = vst [vmem:[#allocation7 + $0x30] sm:$0xff] %v650_v44  ;;  %v400_v53 = vadd.f32 %v1180_v20, %v399_v51  ;;  %v731_v55 = vmin.f32 %v730_v49, 255.0  ;;  %v797_v1 = vmin.f32 %v796_v52, 255.0  ;;  %v312_v13 = vadd.f32 %v1180_v20, %v311_v50 }
 0x140   :  { %v313_v56 = vpop.f32.mrf.mxu0  ;;  %v401_v57 = vpop.f32.mrf.mxu1 }
 0x141   :  { %v799_v59 = vmax.f32 %v400_v53, 0.0  ;;  %v896_v62 = vcvt.f32.s32 %v731_v55  ;;  %v962_v16 = vcvt.f32.s32 %v797_v1  ;;  %v733_v26 = vmax.f32 %v312_v13, 0.0 }
 0x142   :  { %v314_v63 = vpop.f32.mrf.mxu0  ;;  %v402_v0 = vpop.f32.mrf.mxu1 }
 0x143   :  { %v403_v2 = vadd.f32 %v1180_v20, %v402_v0  ;;  %v634_v4 = vpack.c.b16 %v896_v62, %v893_v61  ;;  %v315_v5 = vadd.f32 %v1180_v20, %v314_v63  ;;  %v800_v10 = vmin.f32 %v799_v59, 255.0 }
 0x144   :  { %v316_v6 = vpop.f32.mrf.mxu0  ;;  %v404_v8 = vpop.f32.mrf.mxu1  ;;  %v651_v22 = vpack.c.b16 %v962_v16, %v959_v24  ;;  %v734_v38 = vmin.f32 %v733_v26, 255.0 }
 0x145   :  { %v802_v11 = vmax.f32 %v403_v2, 0.0  ;;  %v635_v12 = vpack.c.b8 %v634_v4, %v633_v3  ;;  %v736_v19 = vmax.f32 %v315_v5, 0.0  ;;  %v965_v7 = vcvt.f32.s32 %v800_v10 }
 0x146   :  { %v319_v14 = vpop.f32.mrf.mxu0  ;;  %v407_v15 = vpop.f32.mrf.mxu1  ;;  %v899_v52 = vcvt.f32.s32 %v734_v38 }
 0x147   :  { %v803_v17 = vmin.f32 %v802_v11, 255.0  ;;  %v320_v18 = vadd.f32 %v1180_v20, %v319_v14  ;;  %664 = vst [vmem:[#allocation7 + $0x8] sm:$0xff] %v635_v12  ;;  %v737_v31 = vmin.f32 %v736_v19, 255.0  ;;  %v408_v37 = vadd.f32 %v1180_v20, %v407_v15 }
 0x148   :  { %v321_v21 = vpop.f32.mrf.mxu0  ;;  %v409_v23 = vpop.f32.mrf.mxu1 }
 0x149   :  { %v968_v25 = vcvt.f32.s32 %v803_v17  ;;  %v739_v27 = vmax.f32 %v320_v18, 0.0  ;;  %v902_v45 = vcvt.f32.s32 %v737_v31  ;;  %v805_v50 = vmax.f32 %v408_v37, 0.0 }
 0x14a   :  { %v322_v28 = vpop.f32.mrf.mxu0  ;;  %v410_v29 = vpop.f32.mrf.mxu1 }
 0x14b   :  { %v652_v30 = vpack.c.b16 %v968_v25, %v965_v7  ;;  %v323_v32 = vadd.f32 %v1180_v20, %v322_v28  ;;  %v411_v33 = vadd.f32 %v1180_v20, %v410_v29  ;;  %v740_v39 = vmin.f32 %v739_v27, 255.0 }
 0x14c   :  { %v324_v34 = vpop.f32.mrf.mxu0  ;;  %v412_v35 = vpop.f32.mrf.mxu1  ;;  %v636_v59 = vpack.c.b16 %v902_v45, %v899_v52  ;;  %v806_v0 = vmin.f32 %v805_v50, 255.0 }
 0x14d   :  { %v653_v36 = vpack.c.b8 %v652_v30, %v651_v22  ;;  %v742_v40 = vmax.f32 %v323_v32, 0.0  ;;  %v808_v43 = vmax.f32 %v411_v33, 0.0  ;;  %v905_v53 = vcvt.f32.s32 %v740_v39 }
 0x14e   :  { %v327_v41 = vpop.f32.mrf.mxu0  ;;  %v415_v42 = vpop.f32.mrf.mxu1  ;;  %v971_v14 = vcvt.f32.s32 %v806_v0 }
 0x14f   :  { %670 = vst [vmem:[#allocation7 + $0x38] sm:$0xff] %v653_v36  ;;  %v416_v44 = vadd.f32 %v1180_v20, %v415_v42  ;;  %v743_v46 = vmin.f32 %v742_v40, 255.0  ;;  %v809_v57 = vmin.f32 %v808_v43, 255.0  ;;  %v328_v4 = vadd.f32 %v1180_v20, %v327_v41 }
 0x150   :  { %v329_v47 = vpop.f32.mrf.mxu0  ;;  %v417_v49 = vpop.f32.mrf.mxu1 }
 0x151   :  { %v811_v51 = vmax.f32 %v416_v44, 0.0  ;;  %v908_v54 = vcvt.f32.s32 %v743_v46  ;;  %v974_v8 = vcvt.f32.s32 %v809_v57  ;;  %v745_v17 = vmax.f32 %v328_v4, 0.0 }
 0x152   :  { %v330_v55 = vpop.f32.mrf.mxu0  ;;  %v418_v56 = vpop.f32.mrf.mxu1 }
 0x153   :  { %v419_v58 = vadd.f32 %v1180_v20, %v418_v56  ;;  %v637_v60 = vpack.c.b16 %v908_v54, %v905_v53  ;;  %v331_v61 = vadd.f32 %v1180_v20, %v330_v55  ;;  %v812_v1 = vmin.f32 %v811_v51, 255.0 }
 0x154   :  { %v332_v62 = vpop.f32.mrf.mxu0  ;;  %v420_v63 = vpop.f32.mrf.mxu1  ;;  %v654_v23 = vpack.c.b16 %v974_v8, %v971_v14  ;;  %v746_v30 = vmin.f32 %v745_v17, 255.0 }
 0x155   :  { %v814_v2 = vmax.f32 %v419_v58, 0.0  ;;  %v638_v3 = vpack.c.b8 %v637_v60, %v636_v59  ;;  %v748_v11 = vmax.f32 %v331_v61, 0.0  ;;  %v977_v15 = vcvt.f32.s32 %v812_v1 }
 0x156   :  { %v335_v5 = vpop.f32.mrf.mxu0  ;;  %v423_v6 = vpop.f32.mrf.mxu1  ;;  %v911_v43 = vcvt.f32.s32 %v746_v30 }
 0x157   :  { %v815_v9 = vmin.f32 %v814_v2, 255.0  ;;  %v336_v10 = vadd.f32 %v1180_v20, %v335_v5  ;;  %665 = vst [vmem:[#allocation7 + $0x10] sm:$0xff] %v638_v3  ;;  %v749_v7 = vmin.f32 %v748_v11, 255.0  ;;  %v424_v22 = vadd.f32 %v1180_v20, %v423_v6 }
 0x158   :  { %v337_v12 = vpop.f32.mrf.mxu0  ;;  %v425_v13 = vpop.f32.mrf.mxu1 }
 0x159   :  { %v980_v16 = vcvt.f32.s32 %v815_v9  ;;  %v751_v18 = vmax.f32 %v336_v10, 0.0  ;;  %v914_v37 = vcvt.f32.s32 %v749_v7  ;;  %v817_v41 = vmax.f32 %v424_v22, 0.0 }
 0x15a   :  { %v338_v19 = vpop.f32.mrf.mxu0  ;;  %v426_v21 = vpop.f32.mrf.mxu1 }
 0x15b   :  { %v655_v24 = vpack.c.b16 %v980_v16, %v977_v15  ;;  %v339_v25 = vadd.f32 %v1180_v20, %v338_v19  ;;  %v427_v26 = vadd.f32 %v1180_v20, %v426_v21  ;;  %v752_v31 = vmin.f32 %v751_v18, 255.0 }
 0x15c   :  { %v340_v27 = vpop.f32.mrf.mxu0  ;;  %v428_v28 = vpop.f32.mrf.mxu1  ;;  %v639_v51 = vpack.c.b16 %v914_v37, %v911_v43  ;;  %v818_v56 = vmin.f32 %v817_v41, 255.0 }
 0x15d   :  { %v656_v29 = vpack.c.b8 %v655_v24, %v654_v23  ;;  %v754_v32 = vmax.f32 %v339_v25, 0.0  ;;  %v820_v35 = vmax.f32 %v427_v26, 0.0  ;;  %v917_v44 = vcvt.f32.s32 %v752_v31 }
 0x15e   :  { %v343_v33 = vpop.f32.mrf.mxu0  ;;  %v431_v34 = vpop.f32.mrf.mxu1  ;;  %v983_v5 = vcvt.f32.s32 %v818_v56 }
 0x15f   :  { %671 = vst [vmem:[#allocation7 + $0x40] sm:$0xff] %v656_v29  ;;  %v432_v36 = vadd.f32 %v1180_v20, %v431_v34  ;;  %v755_v38 = vmin.f32 %v754_v32, 255.0  ;;  %v821_v49 = vmin.f32 %v820_v35, 255.0  ;;  %v344_v60 = vadd.f32 %v1180_v20, %v343_v33 }
 0x160   :  { %v345_v39 = vpop.f32.mrf.mxu0  ;;  %v433_v40 = vpop.f32.mrf.mxu1 }
 0x161   :  { %v823_v42 = vmax.f32 %v432_v36, 0.0  ;;  %v920_v45 = vcvt.f32.s32 %v755_v38  ;;  %v986_v63 = vcvt.f32.s32 %v821_v49  ;;  %v757_v9 = vmax.f32 %v344_v60, 0.0 }
 0x162   :  { %v346_v46 = vpop.f32.mrf.mxu0  ;;  %v434_v47 = vpop.f32.mrf.mxu1 }
 0x163   :  { %v435_v50 = vadd.f32 %v1180_v20, %v434_v47  ;;  %v640_v52 = vpack.c.b16 %v920_v45, %v917_v44  ;;  %v347_v53 = vadd.f32 %v1180_v20, %v346_v46  ;;  %v824_v57 = vmin.f32 %v823_v42, 255.0 }
 0x164   :  { %v348_v54 = vpop.f32.mrf.mxu0  ;;  %v436_v55 = vpop.f32.mrf.mxu1  ;;  %v657_v13 = vpack.c.b16 %v986_v63, %v983_v5  ;;  %v758_v24 = vmin.f32 %v757_v9, 255.0 }
 0x165   :  { %v826_v58 = vmax.f32 %v435_v50, 0.0  ;;  %v641_v59 = vpack.c.b8 %v640_v52, %v639_v51  ;;  %v760_v2 = vmax.f32 %v347_v53, 0.0  ;;  %v989_v6 = vcvt.f32.s32 %v824_v57 }
 0x166   :  { %v351_v61 = vpop.f32.mrf.mxu0  ;;  %v439_v62 = vpop.f32.mrf.mxu1  ;;  %v923_v37 = vcvt.f32.s32 %v758_v24 }
 0x167   :  { %v827_v0 = vmin.f32 %v826_v58, 255.0  ;;  %v352_v1 = vadd.f32 %v1180_v20, %v351_v61  ;;  %666 = vst [vmem:[#allocation7 + $0x18] sm:$0xff] %v641_v59  ;;  %v761_v15 = vmin.f32 %v760_v2, 255.0  ;;  %v440_v16 = vadd.f32 %v1180_v20, %v439_v62 }
 0x168   :  { %v353_v3 = vpop.f32.mrf.mxu0  ;;  %v441_v4 = vpop.f32.mrf.mxu1 }
 0x169   :  { %v992_v8 = vcvt.f32.s32 %v827_v0  ;;  %v763_v10 = vmax.f32 %v352_v1, 0.0  ;;  %v926_v30 = vcvt.f32.s32 %v761_v15  ;;  %v829_v31 = vmax.f32 %v440_v16, 0.0 }
 0x16a   :  { %v354_v11 = vpop.f32.mrf.mxu0  ;;  %v442_v12 = vpop.f32.mrf.mxu1 }
 0x16b   :  { %v658_v14 = vpack.c.b16 %v992_v8, %v989_v6  ;;  %v355_v17 = vadd.f32 %v1180_v20, %v354_v11  ;;  %v443_v18 = vadd.f32 %v1180_v20, %v442_v12  ;;  %v764_v7 = vmin.f32 %v763_v10, 255.0 }
 0x16c   :  { %v356_v19 = vpop.f32.mrf.mxu0  ;;  %v444_v21 = vpop.f32.mrf.mxu1  ;;  %v642_v45 = vpack.c.b16 %v926_v30, %v923_v37  ;;  %v830_v46 = vmin.f32 %v829_v31, 255.0 }
 0x16d   :  { %v659_v23 = vpack.c.b8 %v658_v14, %v657_v13  ;;  %v766_v25 = vmax.f32 %v355_v17, 0.0  ;;  %v832_v28 = vmax.f32 %v443_v18, 0.0  ;;  %v929_v38 = vcvt.f32.s32 %v764_v7 }
 0x16e   :  { %v359_v26 = vpop.f32.mrf.mxu0  ;;  %v447_v27 = vpop.f32.mrf.mxu1  ;;  %v995_v59 = vcvt.f32.s32 %v830_v46 }
 0x16f   :  { %672 = vst [vmem:[#allocation7 + $0x48] sm:$0xff] %v659_v23  ;;  %v360_v29 = vadd.f32 %v1180_v20, %v359_v26  ;;  %v448_v22 = vadd.f32 %v1180_v20, %v447_v27  ;;  %v767_v32 = vmin.f32 %v766_v25, 255.0  ;;  %v833_v42 = vmin.f32 %v832_v28, 255.0 }
 0x170   :  { %v361_v33 = vpop.f32.mrf.mxu0  ;;  %v449_v34 = vpop.f32.mrf.mxu1 }
 0x171   :  { %v769_v35 = vmax.f32 %v360_v29, 0.0  ;;  %v835_v36 = vmax.f32 %v448_v22, 0.0  ;;  %v932_v39 = vcvt.f32.s32 %v767_v32  ;;  %v998_v56 = vcvt.f32.s32 %v833_v42 }
 0x172   :  { %v362_v40 = vpop.f32.mrf.mxu0  ;;  %v450_v41 = vpop.f32.mrf.mxu1 }
 0x173   :  { %v363_v43 = vadd.f32 %v1180_v20, %v362_v40  ;;  %v451_v44 = vadd.f32 %v1180_v20, %v450_v41  ;;  %v643_v47 = vpack.c.b16 %v932_v39, %v929_v38  ;;  %v770_v51 = vmin.f32 %v769_v35, 255.0 }
 0x174   :  { %v364_v49 = vpop.f32.mrf.mxu0  ;;  %v452_v50 = vpop.f32.mrf.mxu1  ;;  %v836_v52 = vmin.f32 %v835_v36, 255.0  ;;  %v660_v20 = vpack.c.b16 %v998_v56, %v995_v59 }
 0x175   :  { %v772_v53 = vmax.f32 %v363_v43, 0.0  ;;  %v838_v54 = vmax.f32 %v451_v44, 0.0  ;;  %v644_v55 = vpack.c.b8 %v643_v47, %v642_v45  ;;  %v935_v60 = vcvt.f32.s32 %v770_v51 }
 0x176   :  { %v1001_v61 = vcvt.f32.s32 %v836_v52 }
 0x177   :  { %v773_v57 = vmin.f32 %v772_v53, 255.0  ;;  %v839_v58 = vmin.f32 %v838_v54, 255.0  ;;  %667 = vst [vmem:[#allocation7 + $0x20] sm:$0xff] %v644_v55 }
 0x179   :  { %v938_v62 = vcvt.f32.s32 %v773_v57  ;;  %v1004_v63 = vcvt.f32.s32 %v839_v58 }
 0x17b   :  { %v645_v0 = vpack.c.b16 %v938_v62, %v935_v60  ;;  %v661_v1 = vpack.c.b16 %v1004_v63, %v1001_v61 }
 0x17d   :  { %v647_v2 = vpack.c.b8 %v1187_v48, %v645_v0  ;;  %v662_v3 = vpack.c.b8 %v661_v1, %v660_v20 }
 0x17f   :  { %668 = vst [vmem:[#allocation7 + $0x28] sm:$0xff] %v647_v2  ;;  %673 = vst [vmem:[#allocation7 + $0x50] sm:$0xff] %v662_v3 }
 0x180   :  { %1082 = shalt.err (!%p1079_p0)
}
 0x181   :  { %s1105_s28 = smov 128   ;;  %s1106_s29 = smov 8  }
 0x182   :  { %685 = dma.vmem_to_hbm [thread:$0]  %s680_s26, 1408, %s1235_s3, [#allocation4], %s1105_s28, %s1105_s28, %s1106_s29  }
 0x183   :  { %1095 = dma.done.wait [#allocation4], 1408  }
 0x184   :  { %1096 = vsyncadd [#allocation4], 4294965888 }
 0x185   :  { %689 = vsyncpa [#allocation3], 1 }
 0x186   :  { %690 = vsyncpa [#allocation6], 1 }
 0x187   :  { %691 = vsyncpa [#allocation4], 1 }

</bundles_post_ra>
